<compile_context>
chip_gen: v5e
topology: v5e:2x2
jax: 0.10.0
libtpu: 0.0.40
codegen_flags: <defaults>
</compile_context>

<pallas_src>
from math import exp

import numpy as np
import jax
import jax.numpy as jnp
from jax.experimental import pallas as pl
from jax.experimental.pallas import tpu as pltpu

WINDOW_SIZE = 11
SIGMA = 1.5
C1 = 0.01 ** 2
C2 = 0.03 ** 2


def gaussian(window_size, sigma):
    g = np.array(
        [exp(-((x - window_size // 2) ** 2) / float(2 * sigma ** 2))
         for x in range(window_size)],
        dtype=np.float32,
    )
    return g / g.sum()


def _band_matrix(n, g1d, pad):
    """B[i, r] = g1d[r - i + pad] for |r - i| <= pad, else 0.

    (B @ X) along rows == zero-padded 'same' 1-D correlation with g1d."""
    B = np.zeros((n, n), dtype=np.float32)
    for i in range(n):
        for r in range(max(0, i - pad), min(n, i + pad + 1)):
            B[i, r] = g1d[r - i + pad]
    return B


def _choose_batch(num_planes, w, lane=128):
    """Smallest divisor b of num_planes such that b*w fills >=128 lanes."""
    divisors = [b for b in range(1, num_planes + 1) if num_planes % b == 0]
    for b in divisors:
        if b * w >= lane:
            return b
    return divisors[-1]


def _ssim_kernel(gh_ref, gwt_ref, x1_ref, x2_ref, out_ref, acc_ref):
    gp = pl.program_id(1)
    n_gp = pl.num_programs(1)

    gh = gh_ref[...]                       # (H, H) banded row-blur matrix
    gwt = gwt_ref[...]                     # (BW, BW) block-diag column-blur
    x1 = x1_ref[0].astype(jnp.float32)     # (H, BW) lane-dense slab
    x2 = x2_ref[0].astype(jnp.float32)     # (H, BW)

    def blur(x):
        # zero-padded 'same' depthwise conv2d with the separable 11x11 window,
        # applied independently to every plane folded into the lane axis.
        t = jnp.dot(x, gwt, preferred_element_type=jnp.float32)   # column blur
        return jnp.dot(gh, t, preferred_element_type=jnp.float32)  # row blur

    mu1 = blur(x1)
    mu2 = blur(x2)
    mu1_sq = mu1 * mu1
    mu2_sq = mu2 * mu2
    mu1_mu2 = mu1 * mu2
    sigma1_sq = blur(x1 * x1) - mu1_sq
    sigma2_sq = blur(x2 * x2) - mu2_sq
    sigma12 = blur(x1 * x2) - mu1_mu2

    ssim_map = ((2.0 * mu1_mu2 + C1) * (2.0 * sigma12 + C2)) / (
        (mu1_sq + mu2_sq + C1) * (sigma1_sq + sigma2_sq + C2)
    )

    @pl.when(gp == 0)
    def _():
        acc_ref[...] = jnp.zeros_like(acc_ref)

    # Vector-shaped accumulation (pure VALU); no per-step cross-lane reduce.
    acc_ref[...] += ssim_map

    @pl.when(gp == n_gp - 1)
    def _():
        # Sublane reduce only; the final lane reduce happens in the wrapper.
        out_ref[0] = jnp.sum(acc_ref[...], axis=0, keepdims=True)   # (1, BW)


def ssim_loss(img1, img2, window_size=WINDOW_SIZE, size_average=True):
    assert size_average, "only size_average=True (module default) is implemented"
    N, C, H, W = img1.shape
    planes = N * C
    pad = window_size // 2

    # Fold B planes into the lane axis so the slab's last dim is >= 128.
    B = _choose_batch(planes, W)
    G = planes // B
    BW = B * W

    # Per-core partial sums: leading "parallel" axis (uses both TCs on v7x).
    P = 2 if (G >= 2 and G % 2 == 0) else 1
    Gp = G // P

    g1d = gaussian(window_size, SIGMA)
    gh = jnp.asarray(_band_matrix(H, g1d, pad))                    # (H, H)
    gw_t = _band_matrix(W, g1d, pad).T.astype(np.float32)          # (W, W)
    gwt_blk = jnp.asarray(np.kron(np.eye(B, dtype=np.float32), gw_t))  # (BW, BW)

    def to_slabs(x):
        # (N, C, H, W) -> (G, H, B*W): B consecutive planes folded into lanes.
        # Keep the original dtype (kernel upcasts) to avoid extra HBM traffic.
        x = x.reshape(G, B, H, W)
        x = jnp.transpose(x, (0, 2, 1, 3))
        return x.reshape(G, H, BW)

    x1 = to_slabs(img1)
    x2 = to_slabs(img2)

    # NOTE: gh / gwt_blk blocks never change index so they are only DMA'd once;
    # their double-buffer VMEM cost is negligible at these sizes.
    partial = pl.pallas_call(
        _ssim_kernel,
        out_shape=jax.ShapeDtypeStruct((P, 1, BW), jnp.float32),
        grid_spec=pltpu.PrefetchScalarGridSpec(
            num_scalar_prefetch=0,
            grid=(P, Gp),
            in_specs=[
                pl.BlockSpec((H, H), lambda p, gp: (0, 0)),
                pl.BlockSpec((BW, BW), lambda p, gp: (0, 0)),
                pl.BlockSpec((1, H, BW), lambda p, gp: (p * Gp + gp, 0, 0)),
                pl.BlockSpec((1, H, BW), lambda p, gp: (p * Gp + gp, 0, 0)),
            ],
            out_specs=pl.BlockSpec((1, 1, BW), lambda p, gp: (p, 0, 0)),
            scratch_shapes=[pltpu.VMEM((H, BW), jnp.float32)],
        ),
        compiler_params=pltpu.CompilerParams(
            dimension_semantics=("parallel", "arbitrary")),
    )(gh, gwt_blk, x1, x2)

    return jnp.sum(partial) / (planes * H * W)


def _ssim_ref(img1, img2, window_size=WINDOW_SIZE):
    """Pure-JAX reference mirroring the PyTorch _ssim (for validation)."""
    N, C, H, W = img1.shape
    pad = window_size // 2
    g1d = gaussian(window_size, SIGMA)
    w2d = np.outer(g1d, g1d).astype(np.float32)
    win = jnp.asarray(np.broadcast_to(w2d, (C, 1, window_size, window_size)))

    def conv(x):
        return jax.lax.conv_general_dilated(
            x, win, window_strides=(1, 1),
            padding=[(pad, pad), (pad, pad)],
            dimension_numbers=("NCHW", "OIHW", "NCHW"),
            feature_group_count=C)

    mu1 = conv(img1)
    mu2 = conv(img2)
    mu1_sq, mu2_sq, mu1_mu2 = mu1 * mu1, mu2 * mu2, mu1 * mu2
    sigma1_sq = conv(img1 * img1) - mu1_sq
    sigma2_sq = conv(img2 * img2) - mu2_sq
    sigma12 = conv(img1 * img2) - mu1_mu2
    ssim_map = ((2 * mu1_mu2 + C1) * (2 * sigma12 + C2)) / (
        (mu1_sq + mu2_sq + C1) * (sigma1_sq + sigma2_sq + C2))
    return ssim_map.mean()


if __name__ == "__main__":
    key = jax.random.PRNGKey(0)
    k1, k2 = jax.random.split(key)
    img1 = jax.random.uniform(k1, (2, 4, 16, 16), dtype=jnp.float32)
    img2 = jax.random.uniform(k2, (2, 4, 16, 16), dtype=jnp.float32)

    out = ssim_loss(img1, img2)
    out = jax.block_until_ready(out)

    ref = jax.block_until_ready(_ssim_ref(img1, img2))
    np.testing.assert_allclose(np.asarray(out), np.asarray(ref),
                               rtol=1e-4, atol=2e-5)

    print("KERNEL_OK")
</pallas_src>

<mosaic_0001>
module attributes {stable_mosaic.version = 11 : i64} {
  func.func @_ssim_kernel(%arg0: i32, %arg1: i32, %arg2: memref<16x16xf32, #tpu.memory_space<vmem>>, %arg3: memref<128x128xf32, #tpu.memory_space<vmem>>, %arg4: memref<1x16x128xf32, #tpu.memory_space<vmem>>, %arg5: memref<1x16x128xf32, #tpu.memory_space<vmem>>, %arg6: memref<1x1x128xf32, #tpu.memory_space<vmem>>, %arg7: memref<16x128xf32, #tpu.memory_space<vmem>>) attributes {dimension_semantics = [#tpu.dimension_semantics<parallel>, #tpu.dimension_semantics<arbitrary>], iteration_bounds = array<i64: 1, 1>, scalar_prefetch = 0 : i64, scratch_operands = 1 : i64, tpu.core_type = #tpu.core_type<tc>, window_params = [{pipeline_mode = #tpu.pipeline_mode<synchronous>, transform_indices = @transform_0, window_bounds = array<i64: 16, 16>}, {pipeline_mode = #tpu.pipeline_mode<synchronous>, transform_indices = @transform_1, window_bounds = array<i64: 128, 128>}, {transform_indices = @transform_2, window_bounds = array<i64: 1, 16, 128>}, {transform_indices = @transform_3, window_bounds = array<i64: 1, 16, 128>}, {transform_indices = @transform_4, window_bounds = array<i64: 1, 1, 128>}]} {
    %c0 = arith.constant 0 : index
    %c0_0 = arith.constant 0 : index
    %0 = vector.load %arg2[%c0, %c0_0] : memref<16x16xf32, #tpu.memory_space<vmem>>, vector<16x16xf32>
    %c0_1 = arith.constant 0 : index
    %c0_2 = arith.constant 0 : index
    %1 = vector.load %arg3[%c0_1, %c0_2] : memref<128x128xf32, #tpu.memory_space<vmem>>, vector<128x128xf32>
    %c0_3 = arith.constant 0 : index
    %c0_4 = arith.constant 0 : index
    %c0_5 = arith.constant 0 : index
    %2 = vector.load %arg4[%c0_3, %c0_4, %c0_5] : memref<1x16x128xf32, #tpu.memory_space<vmem>>, vector<1x16x128xf32>
    %3 = vector.shape_cast %2 : vector<1x16x128xf32> to vector<16x128xf32>
    %c0_6 = arith.constant 0 : index
    %c0_7 = arith.constant 0 : index
    %c0_8 = arith.constant 0 : index
    %4 = vector.load %arg5[%c0_6, %c0_7, %c0_8] : memref<1x16x128xf32, #tpu.memory_space<vmem>>, vector<1x16x128xf32>
    %5 = vector.shape_cast %4 : vector<1x16x128xf32> to vector<16x128xf32>
    %cst = arith.constant dense<0.000000e+00> : vector<16x128xf32>
    %6 = tpu.matmul %3, %1, %cst {dimension_numbers = #tpu.dot_dimension_numbers<[1], [0], [0], [1], [0, 0, 1, 1], [], []>} : vector<16x128xf32>, vector<128x128xf32>, vector<16x128xf32> -> vector<16x128xf32>
    %cst_9 = arith.constant dense<0.000000e+00> : vector<16x128xf32>
    %7 = tpu.matmul %0, %6, %cst_9 {dimension_numbers = #tpu.dot_dimension_numbers<[1], [0], [0], [1], [0, 0, 1, 1], [], []>} : vector<16x16xf32>, vector<16x128xf32>, vector<16x128xf32> -> vector<16x128xf32>
    %cst_10 = arith.constant dense<0.000000e+00> : vector<16x128xf32>
    %8 = tpu.matmul %5, %1, %cst_10 {dimension_numbers = #tpu.dot_dimension_numbers<[1], [0], [0], [1], [0, 0, 1, 1], [], []>} : vector<16x128xf32>, vector<128x128xf32>, vector<16x128xf32> -> vector<16x128xf32>
    %cst_11 = arith.constant dense<0.000000e+00> : vector<16x128xf32>
    %9 = tpu.matmul %0, %8, %cst_11 {dimension_numbers = #tpu.dot_dimension_numbers<[1], [0], [0], [1], [0, 0, 1, 1], [], []>} : vector<16x16xf32>, vector<16x128xf32>, vector<16x128xf32> -> vector<16x128xf32>
    %10 = arith.mulf %7, %7 : vector<16x128xf32>
    %11 = arith.mulf %9, %9 : vector<16x128xf32>
    %12 = arith.mulf %7, %9 : vector<16x128xf32>
    %13 = arith.mulf %3, %3 : vector<16x128xf32>
    %cst_12 = arith.constant dense<0.000000e+00> : vector<16x128xf32>
    %14 = tpu.matmul %13, %1, %cst_12 {dimension_numbers = #tpu.dot_dimension_numbers<[1], [0], [0], [1], [0, 0, 1, 1], [], []>} : vector<16x128xf32>, vector<128x128xf32>, vector<16x128xf32> -> vector<16x128xf32>
    %cst_13 = arith.constant dense<0.000000e+00> : vector<16x128xf32>
    %15 = tpu.matmul %0, %14, %cst_13 {dimension_numbers = #tpu.dot_dimension_numbers<[1], [0], [0], [1], [0, 0, 1, 1], [], []>} : vector<16x16xf32>, vector<16x128xf32>, vector<16x128xf32> -> vector<16x128xf32>
    %16 = arith.subf %15, %10 : vector<16x128xf32>
    %17 = arith.mulf %5, %5 : vector<16x128xf32>
    %cst_14 = arith.constant dense<0.000000e+00> : vector<16x128xf32>
    %18 = tpu.matmul %17, %1, %cst_14 {dimension_numbers = #tpu.dot_dimension_numbers<[1], [0], [0], [1], [0, 0, 1, 1], [], []>} : vector<16x128xf32>, vector<128x128xf32>, vector<16x128xf32> -> vector<16x128xf32>
    %cst_15 = arith.constant dense<0.000000e+00> : vector<16x128xf32>
    %19 = tpu.matmul %0, %18, %cst_15 {dimension_numbers = #tpu.dot_dimension_numbers<[1], [0], [0], [1], [0, 0, 1, 1], [], []>} : vector<16x16xf32>, vector<16x128xf32>, vector<16x128xf32> -> vector<16x128xf32>
    %20 = arith.subf %19, %11 : vector<16x128xf32>
    %21 = arith.mulf %3, %5 : vector<16x128xf32>
    %cst_16 = arith.constant dense<0.000000e+00> : vector<16x128xf32>
    %22 = tpu.matmul %21, %1, %cst_16 {dimension_numbers = #tpu.dot_dimension_numbers<[1], [0], [0], [1], [0, 0, 1, 1], [], []>} : vector<16x128xf32>, vector<128x128xf32>, vector<16x128xf32> -> vector<16x128xf32>
    %cst_17 = arith.constant dense<0.000000e+00> : vector<16x128xf32>
    %23 = tpu.matmul %0, %22, %cst_17 {dimension_numbers = #tpu.dot_dimension_numbers<[1], [0], [0], [1], [0, 0, 1, 1], [], []>} : vector<16x16xf32>, vector<16x128xf32>, vector<16x128xf32> -> vector<16x128xf32>
    %24 = arith.subf %23, %12 : vector<16x128xf32>
    %cst_18 = arith.constant 2.000000e+00 : f32
    %25 = vector.broadcast %cst_18 : f32 to vector<16x128xf32>
    %26 = arith.mulf %25, %12 : vector<16x128xf32>
    %cst_19 = arith.constant 9.99999974E-5 : f32
    %27 = vector.broadcast %cst_19 : f32 to vector<16x128xf32>
    %28 = arith.addf %26, %27 : vector<16x128xf32>
    %cst_20 = arith.constant 2.000000e+00 : f32
    %29 = vector.broadcast %cst_20 : f32 to vector<16x128xf32>
    %30 = arith.mulf %29, %24 : vector<16x128xf32>
    %cst_21 = arith.constant 8.99999984E-4 : f32
    %31 = vector.broadcast %cst_21 : f32 to vector<16x128xf32>
    %32 = arith.addf %30, %31 : vector<16x128xf32>
    %33 = arith.mulf %28, %32 : vector<16x128xf32>
    %34 = arith.addf %10, %11 : vector<16x128xf32>
    %cst_22 = arith.constant 9.99999974E-5 : f32
    %35 = vector.broadcast %cst_22 : f32 to vector<16x128xf32>
    %36 = arith.addf %34, %35 : vector<16x128xf32>
    %37 = arith.addf %16, %20 : vector<16x128xf32>
    %cst_23 = arith.constant 8.99999984E-4 : f32
    %38 = vector.broadcast %cst_23 : f32 to vector<16x128xf32>
    %39 = arith.addf %37, %38 : vector<16x128xf32>
    %40 = arith.mulf %36, %39 : vector<16x128xf32>
    %41 = arith.divf %33, %40 : vector<16x128xf32>
    %c0_i32 = arith.constant 0 : i32
    %42 = arith.cmpi eq, %arg1, %c0_i32 : i32
    %43 = arith.extui %42 : i1 to i32
    %c0_i32_24 = arith.constant 0 : i32
    %44 = arith.cmpi ne, %43, %c0_i32_24 : i32
    scf.if %44 {
      %cst_31 = arith.constant 0.000000e+00 : f32
      %51 = vector.broadcast %cst_31 : f32 to vector<16x128xf32>
      %c0_32 = arith.constant 0 : index
      %c0_33 = arith.constant 0 : index
      %52 = vector.load %arg7[%c0_32, %c0_33] : memref<16x128xf32, #tpu.memory_space<vmem>>, vector<16x128xf32>
      tpu.vector_store %arg7[%c0_32, %c0_33], %51 {strides = array<i32>} : memref<16x128xf32, #tpu.memory_space<vmem>>, vector<16x128xf32>,
    } else {
    }
    %c0_25 = arith.constant 0 : index
    %c0_26 = arith.constant 0 : index
    %45 = vector.load %arg7[%c0_25, %c0_26] : memref<16x128xf32, #tpu.memory_space<vmem>>, vector<16x128xf32>
    %46 = arith.addf %45, %41 : vector<16x128xf32>
    %c0_27 = arith.constant 0 : index
    %c0_28 = arith.constant 0 : index
    %47 = vector.load %arg7[%c0_27, %c0_28] : memref<16x128xf32, #tpu.memory_space<vmem>>, vector<16x128xf32>
    tpu.vector_store %arg7[%c0_27, %c0_28], %46 {strides = array<i32>} : memref<16x128xf32, #tpu.memory_space<vmem>>, vector<16x128xf32>,
    %c0_i32_29 = arith.constant 0 : i32
    %48 = arith.cmpi eq, %arg1, %c0_i32_29 : i32
    %49 = arith.extui %48 : i1 to i32
    %c0_i32_30 = arith.constant 0 : i32
    %50 = arith.cmpi ne, %49, %c0_i32_30 : i32
    scf.if %50 {
      %c0_31 = arith.constant 0 : index
      %c0_32 = arith.constant 0 : index
      %51 = vector.load %arg7[%c0_31, %c0_32] : memref<16x128xf32, #tpu.memory_space<vmem>>, vector<16x128xf32>
      %cst_33 = arith.constant dense<0.000000e+00> : vector<128xf32>
      %52 = vector.multi_reduction <add>, %51, %cst_33 [0] : vector<16x128xf32> to vector<128xf32>
      %53 = vector.shape_cast %52 : vector<128xf32> to vector<1x128xf32>
      %c0_34 = arith.constant 0 : index
      %c0_35 = arith.constant 0 : index
      %c0_36 = arith.constant 0 : index
      %54 = vector.load %arg6[%c0_34, %c0_35, %c0_36] : memref<1x1x128xf32, #tpu.memory_space<vmem>>, vector<1x1x128xf32>
      %55 = vector.shape_cast %54 : vector<1x1x128xf32> to vector<1x128xf32>
      %56 = vector.shape_cast %53 : vector<1x128xf32> to vector<1x1x128xf32>
      tpu.vector_store %arg6[%c0_34, %c0_35, %c0_36], %56 {strides = array<i32>} : memref<1x1x128xf32, #tpu.memory_space<vmem>>, vector<1x1x128xf32>,
    } else {
    }
    return
  }
  func.func @transform_0(%arg0: i32, %arg1: i32) -> (i32, i32) {
    %c0_i32 = arith.constant 0 : i32
    %c0_i32_0 = arith.constant 0 : i32
    %c0_i32_1 = arith.constant 0 : i32
    return %c0_i32, %c0_i32_0 : i32, i32
  }
  func.func @transform_1(%arg0: i32, %arg1: i32) -> (i32, i32) {
    %c0_i32 = arith.constant 0 : i32
    %c0_i32_0 = arith.constant 0 : i32
    %c0_i32_1 = arith.constant 0 : i32
    return %c0_i32, %c0_i32_0 : i32, i32
  }
  func.func @transform_2(%arg0: i32, %arg1: i32) -> (i32, i32, i32) {
    %c1_i32 = arith.constant 1 : i32
    %0 = arith.muli %arg0, %c1_i32 : i32
    %1 = arith.addi %0, %arg1 : i32
    %c0_i32 = arith.constant 0 : i32
    %c0_i32_0 = arith.constant 0 : i32
    %c0_i32_1 = arith.constant 0 : i32
    return %1, %c0_i32, %c0_i32_0 : i32, i32, i32
  }
  func.func @transform_3(%arg0: i32, %arg1: i32) -> (i32, i32, i32) {
    %c1_i32 = arith.constant 1 : i32
    %0 = arith.muli %arg0, %c1_i32 : i32
    %1 = arith.addi %0, %arg1 : i32
    %c0_i32 = arith.constant 0 : i32
    %c0_i32_0 = arith.constant 0 : i32
    %c0_i32_1 = arith.constant 0 : i32
    return %1, %c0_i32, %c0_i32_0 : i32, i32, i32
  }
  func.func @transform_4(%arg0: i32, %arg1: i32) -> (i32, i32, i32) {
    %c0_i32 = arith.constant 0 : i32
    %c0_i32_0 = arith.constant 0 : i32
    %c0_i32_1 = arith.constant 0 : i32
    return %arg0, %c0_i32, %c0_i32_0 : i32, i32, i32
  }
}

</mosaic_0001>

<bundles_post_ra>
// kernel: tpu_custom_call.1
= control target key start
LH: loop header
LB: loop body
LE: loop exit
PB: predicated region body
PF: predicated region fallthrough
CT: control target
= control target key end

     0   :  { %9 = vsyncpa [#allocation4], 0  ;;  %s806_s0 = inlined_call_operand.hbm [shape: f32[16,16], index: 0, kind: input, shape index: {}]   ;;  %s807_s1 = inlined_call_operand.hbm [shape: f32[128,128], index: 1, kind: input, shape index: {}]   ;;  %s808_s2 = inlined_call_operand.hbm [shape: f32[1,16,128], index: 2, kind: input, shape index: {}]   ;;  %s809_s3 = inlined_call_operand.hbm [shape: f32[1,16,128], index: 3, kind: input, shape index: {}]   ;;  %s810_s4 = inlined_call_operand.hbm [shape: f32[1,1,128], index: 4, kind: output, shape index: {}]  }
   0x1   :  { %10 = vsyncpa [#allocation7], 0 }
   0x2   :  { %11 = vsyncpa [#allocation10], 0 }
   0x3   :  { %12 = vsyncpa [#allocation5], 0  ;;  %s30_s17 = sshll.u32 %s807_s1, 4  ;;  %s611_s18 = smov [#allocation6]   ;;  %s31_s17 = int_to_ptr.hbm [resolvable:$true] %s30_s17 }
   0x4   :  { %s32_s19 = sshll.u32 %s611_s18, 4  ;;  %s17_s22 = sshll.u32 %s806_s0, 4  ;;  %s33_s19 = int_to_ptr.vmem [resolvable:$true] %s32_s19  ;;  %s18_s22 = int_to_ptr.hbm [resolvable:$true] %s17_s22 }
   0x5   :  { %s612_s23 = smov 128   ;;  %s613_s24 = smov 8  }
   0x6   :  { %38 = dma.hbm_to_vmem [thread:$0]  %s31_s17, 2048, %s33_s19, [#allocation7], %s612_s23, %s612_s23, %s613_s24  }
   0x7   :  { %s614_s25 = smov [#allocation3]   ;;  %s47_s29 = sshll.u32 %s808_s2, 4  ;;  %s48_s29 = int_to_ptr.hbm [resolvable:$true] %s47_s29 }
   0x8   :  { %s19_s26 = sshll.u32 %s614_s25, 4  ;;  %s64_s5 = sshll.u32 %s809_s3, 4  ;;  %s20_s26 = int_to_ptr.vmem [resolvable:$true] %s19_s26  ;;  %s65_s5 = int_to_ptr.hbm [resolvable:$true] %s64_s5 }
   0x9   :  { %25 = dma.hbm_to_vmem [thread:$0]  %s18_s22, 256, %s20_s26, [#allocation4], %s612_s23, %s612_s23, %s613_s24  }
   0xa   :  { %s615_s6 = smov [#allocation8]   ;;  %s616_s0 = smov [#allocation9]  }
   0xb   :  { %s49_s7 = sshll.u32 %s615_s6, 4  ;;  %s66_s8 = sshll.u32 %s616_s0, 4  ;;  %s50_s7 = int_to_ptr.vmem [resolvable:$true] %s49_s7  ;;  %s67_s8 = int_to_ptr.vmem [resolvable:$true] %s66_s8 }
   0xc   :  { %55 = dma.hbm_to_vmem [thread:$0]  %s48_s29, 256, %s50_s7, [#allocation7], %s612_s23, %s612_s23, %s613_s24  }
   0xd   :  { %72 = dma.hbm_to_vmem [thread:$0]  %s65_s5, 256, %s67_s8, [#allocation10], %s612_s23, %s612_s23, %s613_s24  }
   0xe   :  { %603 = dma.done.wait [#allocation4], 256  }
   0xf   :  { %604 = vsyncadd [#allocation4], 4294967040 }
  0x10   :  { %605 = dma.done.wait [#allocation7], 2304  }
  0x11   :  { %606 = vsyncadd [#allocation7], 4294964992 }
  0x12   :  { %607 = dma.done.wait [#allocation10], 256  }
  0x13   :  { %608 = vsyncadd [#allocation10], 4294967040  ;;  %v655_v0 = vld [vmem:[#allocation6 + $0x78] sm:$0xff]  ;;  %v657_v1 = vld [vmem:[#allocation6 + $0x70] sm:$0xff]  ;;  %vm136_vm0 = vcmask 130048   ;;  %s617_s2 = smov [#allocation11]  }
  0x14   :  { %113 = vmatpush.msra.mxu0 %v655_v0  ;;  %166 = vmatpush.msra.mxu2 %v655_v0  ;;  %v661_v2 = vld [vmem:[#allocation6 + $0x68] sm:$0xff]  ;;  %v665_v3 = vld [vmem:[#allocation6 + $0x60] sm:$0xff]  ;;  %v669_v4 = vld [vmem:[#allocation6 + $0x58] sm:$0xff]  ;;  %s448_s3 = sshll.u32 %s617_s2, 4  ;;  %s450_s11 = sshll.u32 %s810_s4, 4  ;;  %s449_s3 = int_to_ptr.vmem [resolvable:$true] %s448_s3  ;;  %s451_s11 = int_to_ptr.hbm [resolvable:$true] %s450_s11 }
  0x15   :  { %v673_v5 = vld [vmem:[#allocation6 + $0x50] sm:$0xff]  ;;  %v677_v6 = vld [vmem:[#allocation6 + $0x48] sm:$0xff]  ;;  %v681_v7 = vld [vmem:[#allocation6 + $0x40] sm:$0xff] }
  0x16   :  { %114 = vmatpush.msra.mxu0 %v657_v1  ;;  %167 = vmatpush.msra.mxu2 %v657_v1  ;;  %v685_v8 = vld [vmem:[#allocation6 + $0x38] sm:$0xff]  ;;  %v689_v9 = vld [vmem:[#allocation6 + $0x30] sm:$0xff]  ;;  %v693_v10 = vld [vmem:[#allocation6 + $0x28] sm:$0xff] }
  0x17   :  { %v697_v11 = vld [vmem:[#allocation6 + $0x20] sm:$0xff]  ;;  %v701_v12 = vld [vmem:[#allocation6 + $0x18] sm:$0xff]  ;;  %v705_v13 = vld [vmem:[#allocation6 + $0x10] sm:$0xff] }
  0x18   :  { %115 = vmatpush.msra.mxu0 %v661_v2  ;;  %168 = vmatpush.msra.mxu2 %v661_v2  ;;  %v709_v14 = vld [vmem:[#allocation6 + $0x8] sm:$0xff]  ;;  %v713_v15 = vld [vmem:[#allocation6] sm:$0xff]  ;;  %v717_v17 = vld [vmem:[#allocation9] sm:$0xff] }
  0x19   :  { %v109_v16 = vld [vmem:[#allocation8] sm:$0xff]  ;;  %v110_v18 = vld [vmem:[#allocation8 + $0x8] sm:$0xff]  ;;  %v724_v19 = vld [vmem:[#allocation9 + $0x8] sm:$0xff]  ;;  %v268_v41 = vmul.f32 %v717_v17, %v717_v17 }
  0x1a   :  { %116 = vmatpush.msra.mxu0 %v665_v3  ;;  %169 = vmatpush.msra.mxu2 %v665_v3  ;;  %v318_v20 = vmul.f32 %v717_v17, %v109_v16  ;;  %v319_v21 = vmul.f32 %v724_v19, %v110_v18  ;;  %v744_v25 = vld [vmem:[#allocation3] sm:$0xff]  ;;  %v754_v27 = vld [vmem:[#allocation3 + $0x8] sm:$0xff]  ;;  %v218_v29 = vmul.f32 %v109_v16, %v109_v16 }
  0x1b   :  { %v219_v31 = vmul.f32 %v110_v18, %v110_v18  ;;  %v269_v42 = vmul.f32 %v724_v19, %v724_v19 }
  0x1c   :  { %117 = vmatpush.msra.mxu0 %v669_v4  ;;  %170 = vmatpush.msra.mxu2 %v669_v4 }
  0x1e   :  { %118 = vmatpush.msra.mxu0 %v673_v5  ;;  %171 = vmatpush.msra.mxu2 %v673_v5 }
  0x20   :  { %119 = vmatpush.msra.mxu0 %v677_v6  ;;  %172 = vmatpush.msra.mxu2 %v677_v6 }
  0x22   :  { %120 = vmatpush.msra.mxu0 %v681_v7  ;;  %173 = vmatpush.msra.mxu2 %v681_v7 }
  0x24   :  { %121 = vmatpush.msra.mxu0 %v685_v8  ;;  %174 = vmatpush.msra.mxu2 %v685_v8 }
  0x26   :  { %122 = vmatpush.msra.mxu0 %v689_v9  ;;  %175 = vmatpush.msra.mxu2 %v689_v9 }
  0x28   :  { %123 = vmatpush.msra.mxu0 %v693_v10  ;;  %176 = vmatpush.msra.mxu2 %v693_v10 }
  0x2a   :  { %124 = vmatpush.msra.mxu0 %v697_v11  ;;  %177 = vmatpush.msra.mxu2 %v697_v11 }
  0x2c   :  { %125 = vmatpush.msra.mxu0 %v701_v12  ;;  %178 = vmatpush.msra.mxu2 %v701_v12 }
  0x2e   :  { %126 = vmatpush.msra.mxu0 %v705_v13  ;;  %179 = vmatpush.msra.mxu2 %v705_v13 }
  0x30   :  { %127 = vmatpush.msra.mxu0 %v709_v14  ;;  %180 = vmatpush.msra.mxu2 %v709_v14 }
  0x32   :  { %128 = vmatpush.msra.mxu0 %v713_v15  ;;  %181 = vmatpush.msra.mxu2 %v713_v15 }
  0x33   :  { %129 = vmatmul.f32.vlgmr.msra.gmra.mxu0 %v109_v16  ;;  %182 = vmatmul.f32.vlgmr.msra.gmra.mxu2 %v717_v17 }
  0x34   :  { %320 = vmatpush.msrb.mxu2 %v655_v0 }
  0x36   :  { %321 = vmatpush.msrb.mxu2 %v657_v1 }
  0x38   :  { %322 = vmatpush.msrb.mxu2 %v661_v2 }
  0x3a   :  { %323 = vmatpush.msrb.mxu2 %v665_v3 }
  0x3b   :  { %132 = vmatmul.f32.gmra.mxu0 %v110_v18  ;;  %185 = vmatmul.f32.gmra.mxu2 %v724_v19 }
  0x3c   :  { %324 = vmatpush.msrb.mxu2 %v669_v4 }
  0x3e   :  { %325 = vmatpush.msrb.mxu2 %v673_v5 }
  0x40   :  { %326 = vmatpush.msrb.mxu2 %v677_v6 }
  0x42   :  { %327 = vmatpush.msrb.mxu2 %v681_v7 }
  0x44   :  { %328 = vmatpush.msrb.mxu2 %v685_v8 }
  0x46   :  { %329 = vmatpush.msrb.mxu2 %v689_v9 }
  0x48   :  { %330 = vmatpush.msrb.mxu2 %v693_v10 }
  0x4a   :  { %331 = vmatpush.msrb.mxu2 %v697_v11 }
  0x4c   :  { %332 = vmatpush.msrb.mxu2 %v701_v12 }
  0x4e   :  { %333 = vmatpush.msrb.mxu2 %v705_v13 }
  0x50   :  { %334 = vmatpush.msrb.mxu2 %v709_v14 }
  0x52   :  { %335 = vmatpush.msrb.mxu2 %v713_v15 }
  0x53   :  { %336 = vmatmul.f32.vlgmr.msrb.gmra.mxu2 %v318_v20 }
  0x5b   :  { %339 = vmatmul.f32.gmra.mxu2 %v319_v21 }
  0xb0   :  { %v130_v22 = vpop.f32.mrf.mxu0 }
  0xb6   :  { %v183_v23 = vpop.f32.mrf.mxu2 }
  0xb8   :  { %v133_v24 = vpop.f32.mrf.mxu0 }
  0xb9   :  { %157 = vmatpush.msra.mxu1 %v133_v24 }
  0xbb   :  { %158 = vmatpush.msra.mxu1 %v130_v22 }
  0xbc   :  { %462 = vmatmul.msk.f32.vlgmr.msra.gmra.mxu1 %vm136_vm0, %v744_v25 }
  0xbd   :  { %220 = vmatpush.msrb.mxu1 %v655_v0 }
  0xbe   :  { %v186_v26 = vpop.f32.mrf.mxu2 }
  0xbf   :  { %221 = vmatpush.msrb.mxu1 %v657_v1  ;;  %203 = vmatpush.msra.mxu3 %v186_v26 }
  0xc1   :  { %222 = vmatpush.msrb.mxu1 %v661_v2  ;;  %204 = vmatpush.msra.mxu3 %v183_v23 }
  0xc2   :  { %464 = vmatmul.msk.f32.vlgmr.msra.gmra.mxu3 %vm136_vm0, %v744_v25 }
  0xc3   :  { %223 = vmatpush.msrb.mxu1 %v665_v3 }
  0xc4   :  { %463 = vmatmul.msk.f32.gmra.mxu1 %vm136_vm0, %v754_v27 }
  0xc5   :  { %224 = vmatpush.msrb.mxu1 %v669_v4 }
  0xc7   :  { %225 = vmatpush.msrb.mxu1 %v673_v5 }
  0xc9   :  { %226 = vmatpush.msrb.mxu1 %v677_v6 }
  0xca   :  { %465 = vmatmul.msk.f32.gmra.mxu3 %vm136_vm0, %v754_v27 }
  0xcb   :  { %227 = vmatpush.msrb.mxu1 %v681_v7 }
  0xcd   :  { %228 = vmatpush.msrb.mxu1 %v685_v8 }
  0xcf   :  { %229 = vmatpush.msrb.mxu1 %v689_v9 }
  0xd1   :  { %230 = vmatpush.msrb.mxu1 %v693_v10 }
  0xd3   :  { %231 = vmatpush.msrb.mxu1 %v697_v11 }
  0xd5   :  { %232 = vmatpush.msrb.mxu1 %v701_v12 }
  0xd6   :  { %v337_v28 = vpop.f32.mrf.mxu2 }
  0xd7   :  { %233 = vmatpush.msrb.mxu1 %v705_v13 }
  0xd9   :  { %234 = vmatpush.msrb.mxu1 %v709_v14 }
  0xdb   :  { %235 = vmatpush.msrb.mxu1 %v713_v15 }
  0xdc   :  { %236 = vmatmul.f32.vlgmr.msrb.gmra.mxu1 %v218_v29 }
  0xde   :  { %v340_v30 = vpop.f32.mrf.mxu2 }
  0xdf   :  { %357 = vmatpush.msra.mxu1 %v340_v30 }
  0xe1   :  { %358 = vmatpush.msra.mxu1 %v337_v28 }
  0xe4   :  { %239 = vmatmul.f32.gmra.mxu1 %v219_v31 }
  0xec   :  { %470 = vmatmul.msk.f32.vlgmr.msra.gmra.mxu1 %vm136_vm0, %v744_v25 }
  0xf4   :  { %471 = vmatmul.msk.f32.gmra.mxu1 %vm136_vm0, %v754_v27 }
 0x139   :  { %v160_v32 = vpop.f32.mrf.mxu1 }
 0x13a   :  { %v212_v33 = vmul.f32 %v160_v32, %v160_v32 }
 0x141   :  { %v163_v38 = vpop.f32.mrf.mxu1 }
 0x142   :  { %v213_v46 = vmul.f32 %v163_v38, %v163_v38 }
 0x145   :  { %v206_v34 = vpop.f32.mrf.mxu3 }
 0x146   :  { %v214_v35 = vmul.f32 %v206_v34, %v206_v34  ;;  %v216_v36 = vmul.f32 %v206_v34, %v160_v32 }
 0x148   :  { %v378_v37 = vadd.f32 %v214_v35, %v212_v33 }
 0x14a   :  { %v380_v54 = vadd.f32 0.0001, %v378_v37 }
 0x14d   :  { %v209_v43 = vpop.f32.mrf.mxu3 }
 0x14e   :  { %v215_v55 = vmul.f32 %v209_v43, %v209_v43 }
 0x150   :  { %v379_v60 = vadd.f32 %v215_v55, %v213_v46 }
 0x159   :  { %v237_v39 = vpop.f32.mrf.mxu1 }
 0x161   :  { %v240_v40 = vpop.f32.mrf.mxu1 }
 0x162   :  { %257 = vmatpush.msrb.mxu3 %v240_v40 }
 0x164   :  { %258 = vmatpush.msrb.mxu3 %v237_v39 }
 0x165   :  { %466 = vmatmul.msk.f32.vlgmr.msrb.gmra.mxu3 %vm136_vm0, %v744_v25 }
 0x166   :  { %270 = vmatpush.msra.mxu3 %v655_v0  ;;  %v381_v0 = vadd.f32 0.0001, %v379_v60 }
 0x168   :  { %271 = vmatpush.msra.mxu3 %v657_v1 }
 0x169   :  { %v360_v57 = vpop.f32.mrf.mxu1 }
 0x16a   :  { %272 = vmatpush.msra.mxu3 %v661_v2  ;;  %v366_v62 = vsub.f32 %v360_v57, %v216_v36 }
 0x16c   :  { %273 = vmatpush.msra.mxu3 %v665_v3  ;;  %v372_v3 = vmul.f32 2.0, %v366_v62 }
 0x16d   :  { %467 = vmatmul.msk.f32.gmra.mxu3 %vm136_vm0, %v754_v27 }
 0x16e   :  { %274 = vmatpush.msra.mxu3 %v669_v4 }
 0x170   :  { %275 = vmatpush.msra.mxu3 %v673_v5 }
 0x172   :  { %276 = vmatpush.msra.mxu3 %v677_v6  ;;  %v368_v6 = vmul.f32 2.0, %v216_v36 }
 0x174   :  { %277 = vmatpush.msra.mxu3 %v681_v7  ;;  %v363_v7 = vpop.f32.mrf.mxu1 }
 0x176   :  { %278 = vmatpush.msra.mxu3 %v685_v8  ;;  %v217_v8 = vmul.f32 %v209_v43, %v163_v38 }
 0x178   :  { %279 = vmatpush.msra.mxu3 %v689_v9  ;;  %v369_v24 = vmul.f32 2.0, %v217_v8 }
 0x17a   :  { %280 = vmatpush.msra.mxu3 %v693_v10  ;;  %v374_v10 = vadd.f32 0.0009, %v372_v3  ;;  %v371_v31 = vadd.f32 0.0001, %v369_v24 }
 0x17c   :  { %281 = vmatpush.msra.mxu3 %v697_v11 }
 0x17e   :  { %282 = vmatpush.msra.mxu3 %v701_v12  ;;  %v367_v12 = vsub.f32 %v363_v7, %v217_v8 }
 0x180   :  { %283 = vmatpush.msra.mxu3 %v705_v13  ;;  %v373_v20 = vmul.f32 2.0, %v367_v12 }
 0x182   :  { %284 = vmatpush.msra.mxu3 %v709_v14  ;;  %v375_v28 = vadd.f32 0.0009, %v373_v20 }
 0x184   :  { %285 = vmatpush.msra.mxu3 %v713_v15  ;;  %v370_v15 = vadd.f32 0.0001, %v368_v6  ;;  %v377_v34 = vmul.f32 %v375_v28, %v371_v31 }
 0x185   :  { %286 = vmatmul.f32.vlgmr.msra.gmra.mxu3 %v268_v41 }
 0x186   :  { %v376_v18 = vmul.f32 %v374_v10, %v370_v15 }
 0x18d   :  { %289 = vmatmul.f32.gmra.mxu3 %v269_v42 }
 0x1e8   :  { %v260_v44 = vpop.f32.mrf.mxu3 }
 0x1e9   :  { %v266_v45 = vsub.f32 %v260_v44, %v212_v33 }
 0x1f0   :  { %v263_v47 = vpop.f32.mrf.mxu3 }
 0x1f1   :  { %v267_v48 = vsub.f32 %v263_v47, %v213_v46 }
 0x208   :  { %v287_v49 = vpop.f32.mrf.mxu3 }
 0x210   :  { %v290_v50 = vpop.f32.mrf.mxu3 }
 0x211   :  { %307 = vmatpush.msrb.mxu0 %v290_v50 }
 0x213   :  { %308 = vmatpush.msrb.mxu0 %v287_v49 }
 0x214   :  { %468 = vmatmul.msk.f32.vlgmr.msrb.gmra.mxu0 %vm136_vm0, %v744_v25 }
 0x21c   :  { %469 = vmatmul.msk.f32.gmra.mxu0 %vm136_vm0, %v754_v27 }
 0x291   :  { %v310_v51 = vpop.f32.mrf.mxu0 }
 0x292   :  { %v316_v52 = vsub.f32 %v310_v51, %v214_v35 }
 0x294   :  { %v382_v53 = vadd.f32 %v316_v52, %v266_v45 }
 0x296   :  { %v384_v56 = vadd.f32 0.0009, %v382_v53 }
 0x298   :  { %v386_v58 = vmul.f32 %v384_v56, %v380_v54 }
 0x299   :  { %v313_v59 = vpop.f32.mrf.mxu0 }
 0x29a   :  { %479 = vrcp.f32 %v386_v58  ;;  %v317_v61 = vsub.f32 %v313_v59, %v215_v55  ;;  %v399_v11 = vand.u32 2147483648, %v386_v58  ;;  %v397_v14 = vand.u32 2147483647, %v386_v58 }
 0x29b   :  { %vm393_vm2 = vweird.f32 %v386_v58 }
 0x29c   :  { %v383_v63 = vadd.f32 %v317_v61, %v267_v48  ;;  %v400_v19 = vor.u32 1.1754944e-38, %v399_v11  ;;  %vm398_vm4 = vcmp.eq.f32.partialorder %v397_v14, 8.507059e+37 }
 0x29e   :  { %v385_v1 = vadd.f32 0.0009, %v383_v63 }
 0x2a0   :  { %v480_v2 = vpop.eup %479  ;;  %v387_v4 = vmul.f32 %v385_v1, %v381_v0 }
 0x2a1   :  { %v389_v5 = vmul.f32 %v480_v2, %v386_v58  ;;  %vm394_vm1 = vweird.f32 %v480_v2 }
 0x2a2   :  { %481 = vrcp.f32 %v387_v4  ;;  %vm395_vm3 = vmor %vm393_vm2, %vm394_vm1  ;;  %v414_v27 = vand.u32 2147483648, %v387_v4  ;;  %v412_v30 = vand.u32 2147483647, %v387_v4  ;;  %vm408_vm6 = vweird.f32 %v387_v4 }
 0x2a3   :  { %v390_v9 = vsub.f32 1.0, %v389_v5 }
 0x2a4   :  { %v415_v33 = vor.u32 1.1754944e-38, %v414_v27  ;;  %vm413_vm8 = vcmp.eq.f32.partialorder %v412_v30, 8.507059e+37 }
 0x2a5   :  { %v391_v13 = vmul.f32 %v480_v2, %v390_v9 }
 0x2a7   :  { %v392_v16 = vadd.f32 %v480_v2, %v391_v13 }
 0x2a8   :  { %v482_v17 = vpop.eup %481 }
 0x2a9   :  { %v404_v21 = vmul.f32 %v482_v17, %v387_v4  ;;  %v396_v22 = vsel %vm395_vm3, %v480_v2, %v392_v16  ;;  %vm409_vm5 = vweird.f32 %v482_v17 }
 0x2aa   :  { %v401_v23 = vsel %vm398_vm4, %v400_v19, %v396_v22  ;;  %vm410_vm7 = vmor %vm408_vm6, %vm409_vm5 }
 0x2ab   :  { %v405_v25 = vsub.f32 1.0, %v404_v21  ;;  %v402_v26 = vmul.f32 %v401_v23, %v376_v18 }
 0x2ad   :  { %v406_v29 = vmul.f32 %v482_v17, %v405_v25 }
 0x2af   :  { %v407_v32 = vadd.f32 %v482_v17, %v406_v29 }
 0x2b1   :  { %v411_v35 = vsel %vm410_vm7, %v482_v17, %v407_v32 }
 0x2b2   :  { %v416_v36 = vsel %vm413_vm8, %v415_v33, %v411_v35 }
 0x2b3   :  { %v417_v37 = vmul.f32 %v416_v36, %v377_v34 }
 0x2b5   :  { %v435_v38 = vadd.f32 %v417_v37, %v402_v26 }
 0x2b7   :  { %v436_v39 = vrot.slane %v435_v38, 4 }
 0x2b9   :  { %v437_v40 = vadd.f32 %v436_v39, %v435_v38 }
 0x2bb   :  { %v438_v41 = vrot.slane %v437_v40, 2 }
 0x2bd   :  { %v439_v42 = vadd.f32 %v438_v41, %v437_v40 }
 0x2bf   :  { %v440_v43 = vrot.slane %v439_v42, 1 }
 0x2c1   :  { %v441_v44 = vadd.f32 %v440_v43, %v439_v42 }
 0x2c3   :  { %442 = vst [vmem:[#allocation11] sm:$0x1] %v441_v44 }
 0x2c4   :  { %453 = dma.vmem_to_hbm [thread:$0]  %s449_s3, 16, %s451_s11, [#allocation5]  }
 0x2c5   :  { %609 = dma.done.wait [#allocation5], 16  }
 0x2c6   :  { %610 = vsyncadd [#allocation5], 4294967280 }
 0x2c7   :  { %458 = vsyncpa [#allocation4], 1 }
 0x2c8   :  { %459 = vsyncpa [#allocation7], 1 }
 0x2c9   :  { %460 = vsyncpa [#allocation10], 1 }
 0x2ca   :  { %461 = vsyncpa [#allocation5], 1 }

</bundles_post_ra>
